<compile_context>
chip_gen: v7x
topology: tpu7x:2x2x1
jax: 0.10.0
libtpu: 0.0.40
codegen_flags: <defaults>
</compile_context>

<pallas_src>
import functools
import math

import jax
import jax.numpy as jnp
from jax.experimental import pallas as pl
from jax.experimental.pallas import tpu as pltpu

_MIB = 1024 * 1024


@functools.cache
def _vmem_limit_bytes() -> int:
    """Scoped-VMEM limit to request from the compiler (physical minus headroom)."""
    try:
        cap = int(pltpu.get_tpu_info().vmem_capacity_bytes)
    except Exception:  # no query available -> assume the smallest generation (v7x 64 MiB/TC)
        cap = 64 * _MIB
    # ~12 MiB headroom for compiler-internal scratch; never ask for more than ~100 MiB.
    return max(24 * _MIB, min(cap - 12 * _MIB, 100 * _MIB))


def _sublane(dtype) -> int:
    """Second-minor tile multiple for a dtype: f32 -> 8, bf16 -> 16, int8/fp8 -> 32."""
    return max(8, 32 // jnp.dtype(dtype).itemsize)


def _round_down(x: int, mult: int) -> int:
    return max(mult, (x // mult) * mult)


# ----------------------------------------------------------------------------------------
# Kernels (shared by the resident-weight fast path and the M/N-tiled fallback; only the
# BlockSpecs differ). f32 accumulation on the MXU, bias added in f32, cast at the store.
# ----------------------------------------------------------------------------------------
def _ml_kernel_bias(x_ref, w_ref, b_ref, o_ref):
    y = jnp.dot(x_ref[...], w_ref[...], preferred_element_type=jnp.float32)
    o_ref[...] = (y + b_ref[...].astype(jnp.float32)).astype(o_ref.dtype)


def _ml_kernel_nobias(x_ref, w_ref, o_ref):
    y = jnp.dot(x_ref[...], w_ref[...], preferred_element_type=jnp.float32)
    o_ref[...] = y.astype(o_ref.dtype)


@functools.partial(jax.jit, static_argnames=("tm", "tn", "single_buffer"))
def _multiple_linear_impl(x2d, w2d, b2d, *, tm, tn, single_buffer):
    m, in_features = x2d.shape
    _, n_total = w2d.shape
    has_bias = b2d is not None
    out_dtype = jnp.result_type(x2d.dtype, w2d.dtype,
                                *((b2d.dtype,) if has_bias else ()))

    cost = pl.CostEstimate(
        flops=int(2 * m * in_features * n_total),
        transcendentals=0,
        bytes_accessed=int(
            x2d.size * x2d.dtype.itemsize
            + w2d.size * w2d.dtype.itemsize
            + (b2d.size * b2d.dtype.itemsize if has_bias else 0)
            + m * n_total * jnp.dtype(out_dtype).itemsize),
    )

    def _resident_spec(shape, index_map):
        # Constant index_map -> block never changes; single-buffer it when requested.
        if single_buffer:
            return pl.BlockSpec(shape, index_map, pipeline_mode=pl.Buffered(1))
        return pl.BlockSpec(shape, index_map)

    if tn is None:
        # ---- Fast path: whole (in, n_linears*out) weight resident in VMEM, stream M ----
        grid = (pl.cdiv(m, tm),)
        x_spec = pl.BlockSpec((tm, in_features), lambda i: (i, 0))
        w_spec = _resident_spec((in_features, n_total), lambda i: (0, 0))
        b_spec = _resident_spec((1, n_total), lambda i: (0, 0))
        o_spec = pl.BlockSpec((tm, n_total), lambda i: (i, 0))
        dims = ("parallel",)
    else:
        # ---- Tiled fallback: weight too large to keep resident; tile M and N ----------
        # Full-K contraction per block -> no reduction grid axis, no accumulator scratch.
        grid = (pl.cdiv(m, tm), pl.cdiv(n_total, tn))
        x_spec = pl.BlockSpec((tm, in_features), lambda i, j: (i, 0))
        w_spec = pl.BlockSpec((in_features, tn), lambda i, j: (0, j))
        b_spec = pl.BlockSpec((1, tn), lambda i, j: (0, j))
        o_spec = pl.BlockSpec((tm, tn), lambda i, j: (i, j))
        # Both axes parallel: v7x can shard N across its 2 TCs (halves per-TC weight).
        dims = ("parallel", "parallel")

    in_specs = [x_spec, w_spec] + ([b_spec] if has_bias else [])
    kernel = _ml_kernel_bias if has_bias else _ml_kernel_nobias
    operands = (x2d, w2d, b2d) if has_bias else (x2d, w2d)

    return pl.pallas_call(
        kernel,
        out_shape=jax.ShapeDtypeStruct((m, n_total), out_dtype),
        grid_spec=pltpu.PrefetchScalarGridSpec(
            num_scalar_prefetch=0,
            grid=grid,
            in_specs=in_specs,
            out_specs=o_spec,
        ),
        compiler_params=pltpu.CompilerParams(
            dimension_semantics=dims,
            vmem_limit_bytes=_vmem_limit_bytes(),
        ),
        cost_estimate=cost,
    )(*operands)


def multiple_linear(x, weight, bias=None, *, block_m=2048):
    """x: (..., in_features); weight: (in, n_linears, out); bias: (n_linears, out) or None."""
    in_features, n_linears, out_features = weight.shape
    if x.shape[-1] != in_features:
        raise ValueError(f"x last dim {x.shape[-1]} != in_features {in_features}")
    n_total = n_linears * out_features

    lead_shape = x.shape[:-1]
    m = int(math.prod(lead_shape))
    x2d = x.reshape(m, in_features)
    w2d = weight.reshape(in_features, n_total)            # metadata-only, no HBM transpose
    b2d = None if bias is None else bias.reshape(1, n_total)

    out_dtype = jnp.result_type(x.dtype, weight.dtype,
                                *(() if bias is None else (bias.dtype,)))
    xi = jnp.dtype(x.dtype).itemsize
    wi = jnp.dtype(weight.dtype).itemsize
    oi = jnp.dtype(out_dtype).itemsize
    bi = 0 if bias is None else jnp.dtype(bias.dtype).itemsize
    sub = _sublane(x.dtype)                               # dtype-dependent sublane multiple

    budget = int(_vmem_limit_bytes() * 0.9)               # 10% slack under the scoped limit
    m_ceil = max(sub, -(-m // sub) * sub)

    # Bytes per output row that scale with tm: double-buffered X and Y tiles plus the
    # in-kernel f32 dot-result / bias-add temporary (~2 copies of n_total in f32).
    row_bytes = 2 * in_features * xi + 2 * n_total * oi + 2 * n_total * 4
    # Resident weight+bias footprint. Budget for 2 pipeline buffers so the kernel still
    # fits even if single-buffering (pl.Buffered(1)) is unavailable and we fall back.
    resident = 2 * (in_features * n_total * wi + n_total * bi)

    if resident <= budget // 3 and resident + sub * row_bytes <= budget:
        # -------- Fast path: resident weight, stream M only ---------------------------
        tn = None
        tm = min(block_m, max(sub, (budget - resident) // row_bytes))
        tm = _round_down(tm, 256) if tm >= 512 else _round_down(tm, sub)
        tm = min(tm, m_ceil)
        # NOTE: if n_total < 128 the output stores are masked (vst.msk); we deliberately
        # do NOT pad N to 128 because slicing the padded output back costs a full extra
        # HBM pass over Y, and this kernel is bound by streaming X, not the store path.
    else:
        # -------- Tiled fallback: weight too large to keep VMEM-resident --------------
        # TODO(synk): add a K (in_features) grid axis with an f32 acc scratch and
        # pl.when init/finalize for in_features too large for a (tm, in_features) tile.
        def fits(tm_, tn_):
            per = (2 * tm_ * in_features * xi     # X tiles (double-buffered)
                   + 2 * in_features * tn_ * wi   # W tiles
                   + 2 * tm_ * tn_ * oi           # Y tiles
                   + 2 * tn_ * bi                 # bias tiles
                   + 2 * tm_ * tn_ * 4)           # in-kernel f32 temporaries
            return per <= budget

        if n_total <= 256:
            tn_candidates = [n_total]             # full N dim (allowed even if <128)
        else:
            cap_n = -(-n_total // 256) * 256
            tn_candidates = [t for t in (2048, 1024, 512, 256) if t <= cap_n] or [256]

        tm = _round_down(min(block_m, 512), sub)
        tn = tn_candidates[-1]
        for cand in tn_candidates:                # descending; take the largest that fits
            if fits(tm, cand):
                tn = cand
                break
        while tm > sub and not fits(tm, tn):
            tm = _round_down(tm // 2, sub)
        tm = min(tm, m_ceil)

    try:
        out = _multiple_linear_impl(x2d, w2d, b2d, tm=int(tm),
                                    tn=None if tn is None else int(tn),
                                    single_buffer=(tn is None))
    except Exception:
        # pl.Buffered(1) single-buffering of the resident weight may be unsupported on
        # some jax versions; the budget already assumed 2 buffers, so default
        # double-buffering fits as well.
        out = _multiple_linear_impl(x2d, w2d, b2d, tm=int(tm),
                                    tn=None if tn is None else int(tn),
                                    single_buffer=False)

    return out.reshape(*lead_shape, n_linears, out_features)


def _reference(x, weight, bias):
    b = 0.0 if bias is None else bias
    if x.ndim == 2:
        return jnp.einsum('bi,ijk->bjk', x, weight) + b
    return jnp.einsum('nbi,ijk->nbjk', x, weight) + b


if __name__ == "__main__":
    key = jax.random.PRNGKey(0)
    in_features, out_features, n_linears = 32, 16, 4

    k_w, k_x2, k_x3 = jax.random.split(key, 3)
    # Deterministic parameter init (mirrors nn.init.normal_ / zeros_).
    weight = jax.random.normal(k_w, (in_features, n_linears, out_features), dtype=jnp.float32)
    bias = jnp.zeros((n_linears, out_features), dtype=jnp.float32)

    # 2D input path: (B, in)
    x2 = jax.random.normal(k_x2, (8, in_features), dtype=jnp.float32)
    y2 = jax.block_until_ready(multiple_linear(x2, weight, bias))
    assert y2.shape == (8, n_linears, out_features)
    assert jnp.allclose(y2, _reference(x2, weight, bias), atol=1e-4, rtol=1e-4)

    # 3D input path: (N, B, in)
    x3 = jax.random.normal(k_x3, (2, 8, in_features), dtype=jnp.float32)
    y3 = jax.block_until_ready(multiple_linear(x3, weight, bias))
    assert y3.shape == (2, 8, n_linears, out_features)
    assert jnp.allclose(y3, _reference(x3, weight, bias), atol=1e-4, rtol=1e-4)

    # bias=None path (module with bias=False): no bias operand is DMA'd at all.
    y2n = jax.block_until_ready(multiple_linear(x2, weight, None))
    assert jnp.allclose(y2n, _reference(x2, weight, None), atol=1e-4, rtol=1e-4)

    print("KERNEL_OK")
</pallas_src>

<mosaic_0001>
module attributes {stable_mosaic.version = 11 : i64} {
  func.func @_ml_kernel_bias(%arg0: i32, %arg1: memref<8x32xf32, #tpu.memory_space<vmem>>, %arg2: memref<32x64xf32, #tpu.memory_space<vmem>>, %arg3: memref<1x64xf32, #tpu.memory_space<vmem>>, %arg4: memref<8x64xf32, #tpu.memory_space<vmem>>) attributes {dimension_semantics = [#tpu.dimension_semantics<parallel>], iteration_bounds = array<i64: 1>, scalar_prefetch = 0 : i64, scratch_operands = 0 : i64, tpu.core_type = #tpu.core_type<tc>, window_params = [{transform_indices = @transform_0, window_bounds = array<i64: 8, 32>}, {pipeline_mode = #tpu.pipeline_mode<synchronous>, transform_indices = @transform_1, window_bounds = array<i64: 32, 64>}, {pipeline_mode = #tpu.pipeline_mode<synchronous>, transform_indices = @transform_2, window_bounds = array<i64: 1, 64>}, {transform_indices = @transform_3, window_bounds = array<i64: 8, 64>}]} {
    %c0 = arith.constant 0 : index
    %c0_0 = arith.constant 0 : index
    %0 = vector.load %arg1[%c0, %c0_0] : memref<8x32xf32, #tpu.memory_space<vmem>>, vector<8x32xf32>
    %c0_1 = arith.constant 0 : index
    %c0_2 = arith.constant 0 : index
    %1 = vector.load %arg2[%c0_1, %c0_2] : memref<32x64xf32, #tpu.memory_space<vmem>>, vector<32x64xf32>
    %cst = arith.constant dense<0.000000e+00> : vector<8x64xf32>
    %2 = tpu.matmul %0, %1, %cst {dimension_numbers = #tpu.dot_dimension_numbers<[1], [0], [0], [1], [0, 0, 1, 1], [], []>} : vector<8x32xf32>, vector<32x64xf32>, vector<8x64xf32> -> vector<8x64xf32>
    %c0_3 = arith.constant 0 : index
    %c0_4 = arith.constant 0 : index
    %3 = vector.load %arg3[%c0_3, %c0_4] : memref<1x64xf32, #tpu.memory_space<vmem>>, vector<1x64xf32>
    %4 = vector.broadcast %3 : vector<1x64xf32> to vector<8x64xf32>
    %5 = arith.addf %2, %4 : vector<8x64xf32>
    %c0_5 = arith.constant 0 : index
    %c0_6 = arith.constant 0 : index
    %6 = vector.load %arg4[%c0_5, %c0_6] : memref<8x64xf32, #tpu.memory_space<vmem>>, vector<8x64xf32>
    tpu.vector_store %arg4[%c0_5, %c0_6], %5 {strides = array<i32>} : memref<8x64xf32, #tpu.memory_space<vmem>>, vector<8x64xf32>,
    return
  }
  func.func @transform_0(%arg0: i32) -> (i32, i32) {
    %c0_i32 = arith.constant 0 : i32
    %c0_i32_0 = arith.constant 0 : i32
    return %arg0, %c0_i32 : i32, i32
  }
  func.func @transform_1(%arg0: i32) -> (i32, i32) {
    %c0_i32 = arith.constant 0 : i32
    %c0_i32_0 = arith.constant 0 : i32
    %c0_i32_1 = arith.constant 0 : i32
    return %c0_i32, %c0_i32_0 : i32, i32
  }
  func.func @transform_2(%arg0: i32) -> (i32, i32) {
    %c0_i32 = arith.constant 0 : i32
    %c0_i32_0 = arith.constant 0 : i32
    %c0_i32_1 = arith.constant 0 : i32
    return %c0_i32, %c0_i32_0 : i32, i32
  }
  func.func @transform_3(%arg0: i32) -> (i32, i32) {
    %c0_i32 = arith.constant 0 : i32
    %c0_i32_0 = arith.constant 0 : i32
    return %arg0, %c0_i32 : i32, i32
  }
}

module attributes {stable_mosaic.version = 11 : i64} {
  func.func @_ml_kernel_bias(%arg0: i32, %arg1: memref<8x32xf32, #tpu.memory_space<vmem>>, %arg2: memref<32x64xf32, #tpu.memory_space<vmem>>, %arg3: memref<1x64xf32, #tpu.memory_space<vmem>>, %arg4: memref<8x64xf32, #tpu.memory_space<vmem>>) attributes {dimension_semantics = [#tpu.dimension_semantics<parallel>], iteration_bounds = array<i64: 1>, scalar_prefetch = 0 : i64, scratch_operands = 0 : i64, tpu.core_type = #tpu.core_type<tc>, window_params = [{transform_indices = @transform_0, window_bounds = array<i64: 8, 32>}, {pipeline_mode = #tpu.pipeline_mode<synchronous>, transform_indices = @transform_1, window_bounds = array<i64: 32, 64>}, {pipeline_mode = #tpu.pipeline_mode<synchronous>, transform_indices = @transform_2, window_bounds = array<i64: 1, 64>}, {transform_indices = @transform_3, window_bounds = array<i64: 8, 64>}]} {
    %c0 = arith.constant 0 : index
    %c0_0 = arith.constant 0 : index
    %0 = vector.load %arg1[%c0, %c0_0] : memref<8x32xf32, #tpu.memory_space<vmem>>, vector<8x32xf32>
    %c0_1 = arith.constant 0 : index
    %c0_2 = arith.constant 0 : index
    %1 = vector.load %arg2[%c0_1, %c0_2] : memref<32x64xf32, #tpu.memory_space<vmem>>, vector<32x64xf32>
    %cst = arith.constant dense<0.000000e+00> : vector<8x64xf32>
    %2 = tpu.matmul %0, %1, %cst {dimension_numbers = #tpu.dot_dimension_numbers<[1], [0], [0], [1], [0, 0, 1, 1], [], []>} : vector<8x32xf32>, vector<32x64xf32>, vector<8x64xf32> -> vector<8x64xf32>
    %c0_3 = arith.constant 0 : index
    %c0_4 = arith.constant 0 : index
    %3 = vector.load %arg3[%c0_3, %c0_4] : memref<1x64xf32, #tpu.memory_space<vmem>>, vector<1x64xf32>
    %4 = vector.broadcast %3 : vector<1x64xf32> to vector<8x64xf32>
    %5 = arith.addf %2, %4 : vector<8x64xf32>
    %c0_5 = arith.constant 0 : index
    %c0_6 = arith.constant 0 : index
    %6 = vector.load %arg4[%c0_5, %c0_6] : memref<8x64xf32, #tpu.memory_space<vmem>>, vector<8x64xf32>
    tpu.vector_store %arg4[%c0_5, %c0_6], %5 {strides = array<i32>} : memref<8x64xf32, #tpu.memory_space<vmem>>, vector<8x64xf32>,
    return
  }
  func.func @transform_0(%arg0: i32) -> (i32, i32) {
    %c0_i32 = arith.constant 0 : i32
    %c0_i32_0 = arith.constant 0 : i32
    return %arg0, %c0_i32 : i32, i32
  }
  func.func @transform_1(%arg0: i32) -> (i32, i32) {
    %c0_i32 = arith.constant 0 : i32
    %c0_i32_0 = arith.constant 0 : i32
    %c0_i32_1 = arith.constant 0 : i32
    return %c0_i32, %c0_i32_0 : i32, i32
  }
  func.func @transform_2(%arg0: i32) -> (i32, i32) {
    %c0_i32 = arith.constant 0 : i32
    %c0_i32_0 = arith.constant 0 : i32
    %c0_i32_1 = arith.constant 0 : i32
    return %c0_i32, %c0_i32_0 : i32, i32
  }
  func.func @transform_3(%arg0: i32) -> (i32, i32) {
    %c0_i32 = arith.constant 0 : i32
    %c0_i32_0 = arith.constant 0 : i32
    return %arg0, %c0_i32 : i32, i32
  }
}

</mosaic_0001>

<bundles_post_ra>
// kernel: _multiple_linear_impl.1
= control target key start
LH: loop header
LB: loop body
LE: loop exit
PB: predicated region body
PF: predicated region fallthrough
CT: control target
= control target key end

     0   :  { %8 = vsyncpa [#allocation3], 0  ;;  %s323_s0 = inlined_call_operand.hbm [shape: f32[8,32], index: 0, kind: input, shape index: {}]   ;;  %s324_s1 = inlined_call_operand.hbm [shape: f32[32,64], index: 1, kind: input, shape index: {}]   ;;  %s325_s2 = inlined_call_operand.vmem [shape: f32[1,64], index: 2, kind: input, shape index: {}]   ;;  %s326_s3 = inlined_call_operand.hbm [shape: f32[8,64], index: 3, kind: output, shape index: {}]  }
   0x1   :  { %9 = vsyncpa [#allocation6], 0 }
   0x2   :  { %10 = vsyncpa [#allocation4], 0  ;;  %s249_s12 = smov [#allocation2]   ;;  %s250_s14 = smov [#allocation5]  }
   0x3   :  { %s17_s13 = sshll.u32 %s249_s12, 4  ;;  %s26_s15 = sshll.u32 %s250_s14, 4  ;;  %s18_s13 = int_to_ptr.vmem [resolvable:$true] %s17_s13  ;;  %s277_s15 = int_to_ptr.vmem [resolvable:$true] %s26_s15 }
   0x4   :  { %s177_s18 = scalar_lea.hbm %s323_s0, 128 }
   0x5   :  { %p178_p0 = scmp.ne.s32.totalorder %s323_s0, %s177_s18  ;;  %p181_p1 = scmp.lt.u32.totalorder %s177_s18, %s323_s0 }
   0x7   :  { %p183_p2 = pnand %p181_p1, %p178_p0 }
   0x9   :  { %186 = shalt.err (!%p183_p2)
}
   0xa   :  { %s187_s23 = scalar_lea.vmem %s18_s13, 128  ;;  %p192_p4 = scmp.lt.s32.totalorder %s18_s13, %s18_s13 }
   0xb   :  { %p188_p3 = scmp.ne.s32.totalorder %s18_s13, %s187_s23  ;;  %p193_p5 = scmp.lt.s32.totalorder %s187_s23, %s187_s23 }
   0xd   :  { %p194_p6 = por %p193_p5, %p192_p4 }
   0xf   :  { %p195_p7 = pnand %p194_p6, %p188_p3 }
  0x11   :  { %198 = shalt.err (!%p195_p7)
}
  0x12   :  { %20 = dma.hbm_to_vmem [thread:$0]  %s323_s0, 128, %s18_s13, [#allocation3]  }
  0x13   :  { %s199_s28 = scalar_lea.hbm %s324_s1, 512 }
  0x14   :  { %p200_p8 = scmp.ne.s32.totalorder %s324_s1, %s199_s28  ;;  %p203_p9 = scmp.lt.u32.totalorder %s199_s28, %s324_s1 }
  0x16   :  { %p205_p10 = pnand %p203_p9, %p200_p8 }
  0x18   :  { %208 = shalt.err (!%p205_p10)
}
  0x19   :  { %s209_s6 = scalar_lea.vmem %s277_s15, 512  ;;  %p214_p12 = scmp.lt.s32.totalorder %s277_s15, %s277_s15 }
  0x1a   :  { %p210_p11 = scmp.ne.s32.totalorder %s277_s15, %s209_s6  ;;  %p215_p13 = scmp.lt.s32.totalorder %s209_s6, %s209_s6 }
  0x1c   :  { %p216_p0 = por %p215_p13, %p214_p12 }
  0x1e   :  { %p217_p1 = pnand %p216_p0, %p210_p11 }
  0x20   :  { %220 = shalt.err (!%p217_p1)
}
  0x21   :  { %s251_s0 = smov 128   ;;  %s252_s7 = smov 8  }
  0x22   :  { %32 = dma.hbm_to_vmem [thread:$0]  %s324_s1, 512, %s277_s15, [#allocation6], %s251_s0, %s251_s0, %s252_s7  }
  0x23   :  { %243 = dma.done.wait [#allocation3], 128  }
  0x24   :  { %244 = vsyncadd [#allocation3], 4294967168 }
  0x25   :  { %245 = dma.done.wait [#allocation6], 512  }
  0x26   :  { %246 = vsyncadd [#allocation6], 4294966784  ;;  %v253_v0 = vmov 0.0|0.0   ;;  %vm254_vm0 = vmmov 0   ;;  %v255_v1 = vmov 0.0   ;;  %v42_v2 = vld [vmem:[#allocation5] sm:$0xff] }
  0x27   :  { %163 = vmatprep.subr.bf16.mxu0 %v253_v0  ;;  %160 = vmatprep.mubr.msk.f32.mxu0 %vm254_vm0, %v255_v1  ;;  %v43_v3 = vld [vmem:[#allocation5 + $0x8] sm:$0xff]  ;;  %v44_v4 = vld [vmem:[#allocation5 + $0x10] sm:$0xff]  ;;  %v45_v6 = vld [vmem:[#allocation5 + $0x18] sm:$0xff]  ;;  %vm53_vm1 = vcmask 261120   ;;  %s256_s11 = smov [#allocation7]   ;;  %vm127_vm2 = vcmask 523264  }
  0x28   :  { %v164_v5 = vpack.c.bf16 %v43_v3, %v42_v2  ;;  %v167_v7 = vpack.c.bf16 %v45_v6, %v44_v4  ;;  %v41_v8 = vld [vmem:[#allocation2] sm:$0xff]  ;;  %s135_s12 = sshll.u32 %s256_s11, 4  ;;  %s136_s12 = int_to_ptr.vmem [resolvable:$true] %s135_s12 }
  0x29   :  { %v145_v9 = vld [vmem:[%s325_s2] ss:$0 sm:$0xff]  ;;  %s221_s13 = scalar_lea.vmem %s136_s12, 128  ;;  %p226_p3 = scmp.lt.s32.totalorder %s136_s12, %s136_s12 }
  0x2a   :  { %165 = vmatpush3.bf16.msra.mxu0 %v164_v5  ;;  %p222_p2 = scmp.ne.s32.totalorder %s136_s12, %s221_s13  ;;  %p227_p4 = scmp.lt.s32.totalorder %s221_s13, %s221_s13 }
  0x2b   :  { %166 = vmatprep.subr.bf16.mxu0 %v253_v0 }
  0x2c   :  { %p228_p5 = por %p227_p4, %p226_p3 }
  0x2e   :  { %168 = vmatpush3.bf16.msra.mxu0 %v167_v7  ;;  %p229_p6 = pnand %p228_p5, %p222_p2 }
  0x31   :  { %161 = vmatmul.mubr.msk.f32.vlgmr.msra.gmra.mrb[0].mxu0 %vm53_vm1, %v41_v8 }
 0x104   :  { %v123_v10 = vpop.f32.mrb[0].mxu0 }
 0x105   :  { %v124_v11 = vadd.f32 %v145_v9, %v123_v10  ;;  %v162_v12 = vpop.f32.mrb[1].mxu0 }
 0x107   :  { %128 = vst.msk [vmem:[#allocation7] sm:$0xff] %vm127_vm2, %v124_v11 }
 0x108   :  { %232 = shalt.err (!%p229_p6)
}
 0x109   :  { %s233_s16 = scalar_lea.hbm %s326_s3, 128 }
 0x10a   :  { %p234_p7 = scmp.ne.s32.totalorder %s326_s3, %s233_s16  ;;  %p237_p8 = scmp.lt.u32.totalorder %s233_s16, %s326_s3 }
 0x10c   :  { %p239_p9 = pnand %p237_p8, %p234_p7 }
 0x10e   :  { %242 = shalt.err (!%p239_p9)
}
 0x10f   :  { %138 = dma.vmem_to_hbm [thread:$0]  %s136_s12, 128, %s326_s3, [#allocation4]  }
 0x110   :  { %247 = dma.done.wait [#allocation4], 128  }
 0x111   :  { %248 = vsyncadd [#allocation4], 4294967168 }
 0x112   :  { %142 = vsyncpa [#allocation3], 1 }
 0x113   :  { %143 = vsyncpa [#allocation6], 1 }
 0x114   :  { %144 = vsyncpa [#allocation4], 1 }

// kernel: _multiple_linear_impl.1
= control target key start
LH: loop header
LB: loop body
LE: loop exit
PB: predicated region body
PF: predicated region fallthrough
CT: control target
= control target key end

     0   :  { %8 = vsyncpa [#allocation3], 0  ;;  %s323_s0 = inlined_call_operand.hbm [shape: f32[8,32], index: 0, kind: input, shape index: {}]   ;;  %s324_s1 = inlined_call_operand.hbm [shape: f32[32,64], index: 1, kind: input, shape index: {}]   ;;  %s325_s2 = inlined_call_operand.vmem [shape: f32[1,64], index: 2, kind: input, shape index: {}]   ;;  %s326_s3 = inlined_call_operand.hbm [shape: f32[8,64], index: 3, kind: output, shape index: {}]  }
   0x1   :  { %9 = vsyncpa [#allocation6], 0 }
   0x2   :  { %10 = vsyncpa [#allocation4], 0  ;;  %s249_s12 = smov [#allocation2]   ;;  %s250_s14 = smov [#allocation5]  }
   0x3   :  { %s17_s13 = sshll.u32 %s249_s12, 4  ;;  %s26_s15 = sshll.u32 %s250_s14, 4  ;;  %s18_s13 = int_to_ptr.vmem [resolvable:$true] %s17_s13  ;;  %s277_s15 = int_to_ptr.vmem [resolvable:$true] %s26_s15 }
   0x4   :  { %s177_s18 = scalar_lea.hbm %s323_s0, 128 }
   0x5   :  { %p178_p0 = scmp.ne.s32.totalorder %s323_s0, %s177_s18  ;;  %p181_p1 = scmp.lt.u32.totalorder %s177_s18, %s323_s0 }
   0x7   :  { %p183_p2 = pnand %p181_p1, %p178_p0 }
   0x9   :  { %186 = shalt.err (!%p183_p2)
}
   0xa   :  { %s187_s23 = scalar_lea.vmem %s18_s13, 128  ;;  %p192_p4 = scmp.lt.s32.totalorder %s18_s13, %s18_s13 }
   0xb   :  { %p188_p3 = scmp.ne.s32.totalorder %s18_s13, %s187_s23  ;;  %p193_p5 = scmp.lt.s32.totalorder %s187_s23, %s187_s23 }
   0xd   :  { %p194_p6 = por %p193_p5, %p192_p4 }
   0xf   :  { %p195_p7 = pnand %p194_p6, %p188_p3 }
  0x11   :  { %198 = shalt.err (!%p195_p7)
}
  0x12   :  { %20 = dma.hbm_to_vmem [thread:$0]  %s323_s0, 128, %s18_s13, [#allocation3]  }
  0x13   :  { %s199_s28 = scalar_lea.hbm %s324_s1, 512 }
  0x14   :  { %p200_p8 = scmp.ne.s32.totalorder %s324_s1, %s199_s28  ;;  %p203_p9 = scmp.lt.u32.totalorder %s199_s28, %s324_s1 }
  0x16   :  { %p205_p10 = pnand %p203_p9, %p200_p8 }
  0x18   :  { %208 = shalt.err (!%p205_p10)
}
  0x19   :  { %s209_s6 = scalar_lea.vmem %s277_s15, 512  ;;  %p214_p12 = scmp.lt.s32.totalorder %s277_s15, %s277_s15 }
  0x1a   :  { %p210_p11 = scmp.ne.s32.totalorder %s277_s15, %s209_s6  ;;  %p215_p13 = scmp.lt.s32.totalorder %s209_s6, %s209_s6 }
  0x1c   :  { %p216_p0 = por %p215_p13, %p214_p12 }
  0x1e   :  { %p217_p1 = pnand %p216_p0, %p210_p11 }
  0x20   :  { %220 = shalt.err (!%p217_p1)
}
  0x21   :  { %s251_s0 = smov 128   ;;  %s252_s7 = smov 8  }
  0x22   :  { %32 = dma.hbm_to_vmem [thread:$0]  %s324_s1, 512, %s277_s15, [#allocation6], %s251_s0, %s251_s0, %s252_s7  }
  0x23   :  { %243 = dma.done.wait [#allocation3], 128  }
  0x24   :  { %244 = vsyncadd [#allocation3], 4294967168 }
  0x25   :  { %245 = dma.done.wait [#allocation6], 512  }
  0x26   :  { %246 = vsyncadd [#allocation6], 4294966784  ;;  %v253_v0 = vmov 0.0|0.0   ;;  %vm254_vm0 = vmmov 0   ;;  %v255_v1 = vmov 0.0   ;;  %v42_v2 = vld [vmem:[#allocation5] sm:$0xff] }
  0x27   :  { %163 = vmatprep.subr.bf16.mxu0 %v253_v0  ;;  %160 = vmatprep.mubr.msk.f32.mxu0 %vm254_vm0, %v255_v1  ;;  %v43_v3 = vld [vmem:[#allocation5 + $0x8] sm:$0xff]  ;;  %v44_v4 = vld [vmem:[#allocation5 + $0x10] sm:$0xff]  ;;  %v45_v6 = vld [vmem:[#allocation5 + $0x18] sm:$0xff]  ;;  %vm53_vm1 = vcmask 261120   ;;  %s256_s11 = smov [#allocation7]   ;;  %vm127_vm2 = vcmask 523264  }
  0x28   :  { %v164_v5 = vpack.c.bf16 %v43_v3, %v42_v2  ;;  %v167_v7 = vpack.c.bf16 %v45_v6, %v44_v4  ;;  %v41_v8 = vld [vmem:[#allocation2] sm:$0xff]  ;;  %s135_s12 = sshll.u32 %s256_s11, 4  ;;  %s136_s12 = int_to_ptr.vmem [resolvable:$true] %s135_s12 }
  0x29   :  { %v145_v9 = vld [vmem:[%s325_s2] ss:$0 sm:$0xff]  ;;  %s221_s13 = scalar_lea.vmem %s136_s12, 128  ;;  %p226_p3 = scmp.lt.s32.totalorder %s136_s12, %s136_s12 }
  0x2a   :  { %165 = vmatpush3.bf16.msra.mxu0 %v164_v5  ;;  %p222_p2 = scmp.ne.s32.totalorder %s136_s12, %s221_s13  ;;  %p227_p4 = scmp.lt.s32.totalorder %s221_s13, %s221_s13 }
  0x2b   :  { %166 = vmatprep.subr.bf16.mxu0 %v253_v0 }
  0x2c   :  { %p228_p5 = por %p227_p4, %p226_p3 }
  0x2e   :  { %168 = vmatpush3.bf16.msra.mxu0 %v167_v7  ;;  %p229_p6 = pnand %p228_p5, %p222_p2 }
  0x31   :  { %161 = vmatmul.mubr.msk.f32.vlgmr.msra.gmra.mrb[0].mxu0 %vm53_vm1, %v41_v8 }
 0x104   :  { %v123_v10 = vpop.f32.mrb[0].mxu0 }
 0x105   :  { %v124_v11 = vadd.f32 %v145_v9, %v123_v10  ;;  %v162_v12 = vpop.f32.mrb[1].mxu0 }
 0x107   :  { %128 = vst.msk [vmem:[#allocation7] sm:$0xff] %vm127_vm2, %v124_v11 }
 0x108   :  { %232 = shalt.err (!%p229_p6)
}
 0x109   :  { %s233_s16 = scalar_lea.hbm %s326_s3, 128 }
 0x10a   :  { %p234_p7 = scmp.ne.s32.totalorder %s326_s3, %s233_s16  ;;  %p237_p8 = scmp.lt.u32.totalorder %s233_s16, %s326_s3 }
 0x10c   :  { %p239_p9 = pnand %p237_p8, %p234_p7 }
 0x10e   :  { %242 = shalt.err (!%p239_p9)
}
 0x10f   :  { %138 = dma.vmem_to_hbm [thread:$0]  %s136_s12, 128, %s326_s3, [#allocation4]  }
 0x110   :  { %247 = dma.done.wait [#allocation4], 128  }
 0x111   :  { %248 = vsyncadd [#allocation4], 4294967168 }
 0x112   :  { %142 = vsyncpa [#allocation3], 1 }
 0x113   :  { %143 = vsyncpa [#allocation6], 1 }
 0x114   :  { %144 = vsyncpa [#allocation4], 1 }

</bundles_post_ra>
